<compile_context>
chip_gen: v5e
topology: v5e:2x2
jax: 0.10.0
libtpu: 0.0.40
codegen_flags: <defaults>
</compile_context>

<pallas_src>
import functools

import jax
import jax.numpy as jnp
from jax.experimental import pallas as pl
from jax.experimental.pallas import tpu as pltpu

BN_EPS = 1e-5
GRID = 4                 # input spatial size implied by Linear(512, 32)
RPS = GRID * GRID        # rows per sample in the flattened "grid-row" layout
N_ACTIONS = 4
LANE = 128               # lane-dense padded width for the kernel output


def dqn_kernel(x_ref, w1_ref, g1_ref, be1_ref,
               w2_ref, g2_ref, be2_ref,
               w3_ref, g3_ref, be3_ref,
               w4_ref, b4_ref, w5_ref, b5_ref,
               o_ref, y3_ref):
    f32 = jnp.float32
    R = x_ref.shape[0]            # N * 16 rows (full 4x4 grid per sample)
    NB = o_ref.shape[0]           # batch size

    def mm(a, b):
        return jnp.dot(a, b, preferred_element_type=f32)

    def shifted(y, s):
        # out[r] = y[(r + s) mod R]  (XLU sublane roll; no MXU / O(R^2) VMEM).
        # Wrapped / cross-sample rows only land in grid positions that mask2 /
        # mask3 exclude: for the GRID=4 -> 3x3 -> 2x2 geometry the valid
        # region shrinks faster than the tap shift grows (pinned by asserts
        # in the wrapper).
        if s == 0:
            return y
        return pltpu.roll(y, shift=R - s, axis=0)

    def bn_relu(y, gamma, beta, mask, count):
        # One-pass batch stats (biased variance) folded into per-channel
        # scale/shift.  Invalid rows are excluded from the statistics; the
        # affine is applied everywhere because invalid rows are never consumed
        # by valid downstream rows.
        if mask is None:
            s1 = jnp.sum(y, axis=0, keepdims=True) / count
            s2 = jnp.sum(y * y, axis=0, keepdims=True) / count
        else:
            ym = y * mask
            s1 = jnp.sum(ym, axis=0, keepdims=True) / count
            s2 = jnp.sum(ym * y, axis=0, keepdims=True) / count
        var = s2 - s1 * s1
        scale = gamma * jax.lax.rsqrt(var + BN_EPS)
        shift = beta - s1 * scale
        return jnp.maximum(y * scale + shift, 0.0)

    # validity masks on the 4x4 grid (row within sample q = i*4 + j)
    q = jax.lax.broadcasted_iota(jnp.int32, (R, 1), 0)
    qi = q & (RPS - 1)     # i*4 + j within the sample
    qj = q & (GRID - 1)    # j
    mask2 = jnp.logical_and(qj < 3, qi < 12).astype(f32)   # 3x3 valid (conv2)
    mask3 = jnp.logical_and(qj < 2, qi < 8).astype(f32)    # 2x2 valid (conv3)

    conv_taps = (0, 1, GRID, GRID + 1)   # 2x2 VALID taps as row shifts

    # --- conv1 (1x1, 1 -> 64) + BN + ReLU: outer-product broadcast ----------
    # (conv biases dropped in-kernel: exactly cancelled by batch-stat BN.)
    y = x_ref[...] * w1_ref[...]                      # (R,1)*(1,64) -> (R,64)
    y = bn_relu(y, g1_ref[...], be1_ref[...], None, float(R))

    # --- conv2 (2x2 VALID, 64 -> 128): im2col lanes, ONE K=256 matmul -------
    xcat = jnp.concatenate([shifted(y, s) for s in conv_taps], axis=1)
    y = bn_relu(mm(xcat, w2_ref[...]), g2_ref[...], be2_ref[...],
                mask2, float(NB * 9))

    # --- conv3 (2x2 VALID, 128 -> 128): im2col lanes, ONE K=512 matmul ------
    xcat = jnp.concatenate([shifted(y, s) for s in conv_taps], axis=1)
    y = bn_relu(mm(xcat, w3_ref[...]), g3_ref[...], be3_ref[...],
                mask3, float(NB * 4))

    # --- flatten (NCHW .view order folded into w4) + Linear(512,32) + ReLU --
    # Stash conv3 output, pick each sample's 4 valid rows with strided sublane
    # slices, lane-concat into (N, 512), ONE matmul.
    y3_ref[...] = y
    flat = jnp.concatenate(
        [y3_ref[pl.ds(u * GRID + v, NB, stride=RPS), :]
         for u in range(2) for v in range(2)], axis=1)            # (N, 512)
    h = jnp.maximum(mm(flat, w4_ref[...]) + b4_ref[...], 0.0)     # (N, 32)

    # --- action head (lane-dense padded to 128; wrapper slices) -------------
    # TODO(synk): nn.NoisyLinear's factorized-noise sampling has no standard
    # op; only its deterministic (mu-only / eval) Linear path is implemented.
    o_ref[...] = mm(h, w5_ref[...]) + b5_ref[...]                 # (N, 128)


def prepare_params(params):
    """One-time host-side layout plumbing, hoisted out of the jitted forward."""
    A = params["w5"].shape[0]

    def conv2x2(w):   # (O, I, 2, 2) -> (4*I, O), rows tap-major / cin-minor
        return jnp.transpose(w, (2, 3, 1, 0)).reshape(4 * w.shape[1], w.shape[0])

    # Linear(512,32): PyTorch flatten index is c*4 + p -> reorder rows to
    # (position-major, channel-minor) 128-row chunks matching the kernel's
    # lane-concat of the 4 selected conv3 rows.
    w4 = jnp.transpose(params["w4"].reshape(32, 128, 4), (2, 1, 0)).reshape(512, 32)
    # Head weights padded to 128 output lanes -> unmasked lane-dense store.
    w5 = jnp.zeros((32, LANE), jnp.float32).at[:, :A].set(params["w5"].T)
    b5 = jnp.zeros((1, LANE), jnp.float32).at[:, :A].set(params["b5"])

    return dict(
        w1=params["w1"].reshape(1, 64),
        g1=params["g1"].reshape(1, -1), be1=params["be1"].reshape(1, -1),
        w2=conv2x2(params["w2"]),
        g2=params["g2"].reshape(1, -1), be2=params["be2"].reshape(1, -1),
        w3=conv2x2(params["w3"]),
        g3=params["g3"].reshape(1, -1), be3=params["be3"].reshape(1, -1),
        w4=w4, b4=params["b4"].reshape(1, -1),
        w5=w5, b5=b5,
    )


@jax.jit
def dqn_forward(x_nchw, prep):
    N, C, H, W = x_nchw.shape
    assert C == 1 and H == GRID and W == GRID, "Linear(512,32) implies a 1x4x4 input"
    # The roll-based taps + masks are only valid for this exact geometry
    # (valid region shrinks faster than the tap shifts); pin it here.
    assert GRID == 4 and RPS == 16
    R = N * RPS
    x_rows = x_nchw.reshape(R, 1)   # grid-row layout; channels live on lanes

    out = pl.pallas_call(
        dqn_kernel,
        out_shape=jax.ShapeDtypeStruct((N, LANE), jnp.float32),
        scratch_shapes=[pltpu.VMEM((R, 128), jnp.float32)],
    )(x_rows,
      prep["w1"], prep["g1"], prep["be1"],
      prep["w2"], prep["g2"], prep["be2"],
      prep["w3"], prep["g3"], prep["be3"],
      prep["w4"], prep["b4"], prep["w5"], prep["b5"])
    return out[:, :N_ACTIONS]


def dqn_reference(x, params):
    """Pure-JAX replica of the PyTorch forward (fresh module, training-mode BN)."""
    prec = jax.lax.Precision.HIGHEST

    def conv_bn_relu(x, w, b, g, be):
        y = jax.lax.conv_general_dilated(
            x, w, window_strides=(1, 1), padding="VALID",
            dimension_numbers=("NCHW", "OIHW", "NCHW"), precision=prec)
        y = y + b[None, :, None, None]
        mean = y.mean(axis=(0, 2, 3), keepdims=True)
        var = ((y - mean) ** 2).mean(axis=(0, 2, 3), keepdims=True)
        y = (y - mean) / jnp.sqrt(var + BN_EPS)
        y = y * g[None, :, None, None] + be[None, :, None, None]
        return jnp.maximum(y, 0.0)

    y = conv_bn_relu(x, params["w1"], params["b1"], params["g1"], params["be1"])
    y = conv_bn_relu(y, params["w2"], params["b2"], params["g2"], params["be2"])
    y = conv_bn_relu(y, params["w3"], params["b3"], params["g3"], params["be3"])
    y = y.reshape(y.shape[0], -1)                                   # NCHW flatten
    h = jnp.maximum(jnp.dot(y, params["w4"].T, precision=prec) + params["b4"], 0.0)
    return jnp.dot(h, params["w5"].T, precision=prec) + params["b5"]


def init_params(key, n_actions):
    ks = jax.random.split(key, 10)

    def u(k, shape, fan_in):
        b = 1.0 / jnp.sqrt(float(fan_in))
        return jax.random.uniform(k, shape, minval=-b, maxval=b, dtype=jnp.float32)

    return {
        # conv stack (PyTorch-style uniform init; conv biases cancelled by BN)
        "w1": u(ks[0], (64, 1, 1, 1), 1), "b1": u(ks[1], (64,), 1),
        "w2": u(ks[2], (128, 64, 2, 2), 64 * 4), "b2": u(ks[3], (128,), 64 * 4),
        "w3": u(ks[4], (128, 128, 2, 2), 128 * 4), "b3": u(ks[5], (128,), 128 * 4),
        # BatchNorm2d defaults (freshly constructed module)
        "g1": jnp.ones((64,), jnp.float32), "be1": jnp.zeros((64,), jnp.float32),
        "g2": jnp.ones((128,), jnp.float32), "be2": jnp.zeros((128,), jnp.float32),
        "g3": jnp.ones((128,), jnp.float32), "be3": jnp.zeros((128,), jnp.float32),
        # Linear(512, 32)
        "w4": u(ks[6], (32, 512), 512), "b4": u(ks[7], (32,), 512),
        # action head (NoisyLinear -> deterministic Linear(32, n_actions))
        "w5": u(ks[8], (n_actions, 32), 32), "b5": u(ks[9], (n_actions,), 32),
    }


if __name__ == "__main__":
    key = jax.random.PRNGKey(0)
    kp, kx = jax.random.split(key)
    params = init_params(kp, N_ACTIONS)
    prep = prepare_params(params)          # weight reorders hoisted, run once
    x = jax.random.normal(kx, (2, 1, GRID, GRID), dtype=jnp.float32)   # NCHW

    out = jax.block_until_ready(dqn_forward(x, prep))
    ref = jax.block_until_ready(dqn_reference(x, params))

    assert out.shape == (2, N_ACTIONS), out.shape
    err = float(jnp.max(jnp.abs(out - ref)))
    assert err < 1e-3, err

    print("KERNEL_OK")
</pallas_src>

<mosaic_0001>
module attributes {stable_mosaic.version = 11 : i64} {
  func.func @dqn_kernel(%arg0: memref<32x1xf32, #tpu.memory_space<vmem>>, %arg1: memref<1x64xf32, #tpu.memory_space<vmem>>, %arg2: memref<1x64xf32, #tpu.memory_space<vmem>>, %arg3: memref<1x64xf32, #tpu.memory_space<vmem>>, %arg4: memref<256x128xf32, #tpu.memory_space<vmem>>, %arg5: memref<1x128xf32, #tpu.memory_space<vmem>>, %arg6: memref<1x128xf32, #tpu.memory_space<vmem>>, %arg7: memref<512x128xf32, #tpu.memory_space<vmem>>, %arg8: memref<1x128xf32, #tpu.memory_space<vmem>>, %arg9: memref<1x128xf32, #tpu.memory_space<vmem>>, %arg10: memref<512x32xf32, #tpu.memory_space<vmem>>, %arg11: memref<1x32xf32, #tpu.memory_space<vmem>>, %arg12: memref<32x128xf32, #tpu.memory_space<vmem>>, %arg13: memref<1x128xf32, #tpu.memory_space<vmem>>, %arg14: memref<2x128xf32, #tpu.memory_space<vmem>>, %arg15: memref<32x128xf32, #tpu.memory_space<vmem>>) attributes {dimension_semantics = [], scalar_prefetch = 0 : i64, scratch_operands = 1 : i64, tpu.core_type = #tpu.core_type<tc>} {
    %0 = tpu.iota {dimensions = array<i32: 0>} : vector<32x1xi32>
    %c15_i32 = arith.constant 15 : i32
    %1 = vector.broadcast %c15_i32 : i32 to vector<32x1xi32>
    %2 = arith.andi %0, %1 : vector<32x1xi32>
    %c3_i32 = arith.constant 3 : i32
    %3 = vector.broadcast %c3_i32 : i32 to vector<32x1xi32>
    %4 = arith.andi %0, %3 : vector<32x1xi32>
    %c3_i32_0 = arith.constant 3 : i32
    %5 = vector.broadcast %c3_i32_0 : i32 to vector<32x1xi32>
    %6 = arith.cmpi slt, %4, %5 : vector<32x1xi32>
    %c12_i32 = arith.constant 12 : i32
    %7 = vector.broadcast %c12_i32 : i32 to vector<32x1xi32>
    %8 = arith.cmpi slt, %2, %7 : vector<32x1xi32>
    %9 = arith.andi %6, %8 : vector<32x1xi1>
    %10 = arith.extui %9 : vector<32x1xi1> to vector<32x1xi32>
    %11 = arith.sitofp %10 : vector<32x1xi32> to vector<32x1xf32>
    %c2_i32 = arith.constant 2 : i32
    %12 = vector.broadcast %c2_i32 : i32 to vector<32x1xi32>
    %13 = arith.cmpi slt, %4, %12 : vector<32x1xi32>
    %c8_i32 = arith.constant 8 : i32
    %14 = vector.broadcast %c8_i32 : i32 to vector<32x1xi32>
    %15 = arith.cmpi slt, %2, %14 : vector<32x1xi32>
    %16 = arith.andi %13, %15 : vector<32x1xi1>
    %17 = arith.extui %16 : vector<32x1xi1> to vector<32x1xi32>
    %18 = arith.sitofp %17 : vector<32x1xi32> to vector<32x1xf32>
    %c0 = arith.constant 0 : index
    %c0_1 = arith.constant 0 : index
    %19 = vector.load %arg0[%c0, %c0_1] : memref<32x1xf32, #tpu.memory_space<vmem>>, vector<32x1xf32>
    %c0_2 = arith.constant 0 : index
    %c0_3 = arith.constant 0 : index
    %20 = vector.load %arg1[%c0_2, %c0_3] : memref<1x64xf32, #tpu.memory_space<vmem>>, vector<1x64xf32>
    %21 = vector.broadcast %19 : vector<32x1xf32> to vector<32x64xf32>
    %22 = vector.broadcast %20 : vector<1x64xf32> to vector<32x64xf32>
    %23 = arith.mulf %21, %22 : vector<32x64xf32>
    %c0_4 = arith.constant 0 : index
    %c0_5 = arith.constant 0 : index
    %24 = vector.load %arg2[%c0_4, %c0_5] : memref<1x64xf32, #tpu.memory_space<vmem>>, vector<1x64xf32>
    %c0_6 = arith.constant 0 : index
    %c0_7 = arith.constant 0 : index
    %25 = vector.load %arg3[%c0_6, %c0_7] : memref<1x64xf32, #tpu.memory_space<vmem>>, vector<1x64xf32>
    %cst = arith.constant dense<0.000000e+00> : vector<64xf32>
    %26 = vector.multi_reduction <add>, %23, %cst [0] : vector<32x64xf32> to vector<64xf32>
    %27 = vector.shape_cast %26 : vector<64xf32> to vector<1x64xf32>
    %cst_8 = arith.constant 3.200000e+01 : f32
    %28 = vector.broadcast %cst_8 : f32 to vector<1x64xf32>
    %29 = arith.divf %27, %28 : vector<1x64xf32>
    %30 = arith.mulf %23, %23 : vector<32x64xf32>
    %cst_9 = arith.constant dense<0.000000e+00> : vector<64xf32>
    %31 = vector.multi_reduction <add>, %30, %cst_9 [0] : vector<32x64xf32> to vector<64xf32>
    %32 = vector.shape_cast %31 : vector<64xf32> to vector<1x64xf32>
    %cst_10 = arith.constant 3.200000e+01 : f32
    %33 = vector.broadcast %cst_10 : f32 to vector<1x64xf32>
    %34 = arith.divf %32, %33 : vector<1x64xf32>
    %35 = arith.mulf %29, %29 : vector<1x64xf32>
    %36 = arith.subf %34, %35 : vector<1x64xf32>
    %cst_11 = arith.constant 9.99999974E-6 : f32
    %37 = vector.broadcast %cst_11 : f32 to vector<1x64xf32>
    %38 = arith.addf %36, %37 : vector<1x64xf32>
    %39 = math.rsqrt %38 : vector<1x64xf32>
    %40 = arith.mulf %24, %39 : vector<1x64xf32>
    %41 = arith.mulf %29, %40 : vector<1x64xf32>
    %42 = arith.subf %25, %41 : vector<1x64xf32>
    %43 = vector.broadcast %40 : vector<1x64xf32> to vector<32x64xf32>
    %44 = arith.mulf %23, %43 : vector<32x64xf32>
    %45 = vector.broadcast %42 : vector<1x64xf32> to vector<32x64xf32>
    %46 = arith.addf %44, %45 : vector<32x64xf32>
    %cst_12 = arith.constant 0.000000e+00 : f32
    %47 = vector.broadcast %cst_12 : f32 to vector<32x64xf32>
    %48 = arith.maximumf %46, %47 : vector<32x64xf32>
    %c31_i32 = arith.constant 31 : i32
    %49 = tpu.dynamic_rotate %48 by %c31_i32 dim 0 : vector<32x64xf32>, i32 -> vector<32x64xf32>
    %c28_i32 = arith.constant 28 : i32
    %50 = tpu.dynamic_rotate %48 by %c28_i32 dim 0 : vector<32x64xf32>, i32 -> vector<32x64xf32>
    %c27_i32 = arith.constant 27 : i32
    %51 = tpu.dynamic_rotate %48 by %c27_i32 dim 0 : vector<32x64xf32>, i32 -> vector<32x64xf32>
    %52 = tpu.concatenate %48, %49, %50, %51 in 1 : vector<32x64xf32>, vector<32x64xf32>, vector<32x64xf32>, vector<32x64xf32> -> vector<32x256xf32>
    %c0_13 = arith.constant 0 : index
    %c0_14 = arith.constant 0 : index
    %53 = vector.load %arg4[%c0_13, %c0_14] : memref<256x128xf32, #tpu.memory_space<vmem>>, vector<256x128xf32>
    %cst_15 = arith.constant dense<0.000000e+00> : vector<32x128xf32>
    %54 = tpu.matmul %52, %53, %cst_15 {dimension_numbers = #tpu.dot_dimension_numbers<[1], [0], [0], [1], [0, 0, 1, 1], [], []>} : vector<32x256xf32>, vector<256x128xf32>, vector<32x128xf32> -> vector<32x128xf32>
    %c0_16 = arith.constant 0 : index
    %c0_17 = arith.constant 0 : index
    %55 = vector.load %arg5[%c0_16, %c0_17] : memref<1x128xf32, #tpu.memory_space<vmem>>, vector<1x128xf32>
    %c0_18 = arith.constant 0 : index
    %c0_19 = arith.constant 0 : index
    %56 = vector.load %arg6[%c0_18, %c0_19] : memref<1x128xf32, #tpu.memory_space<vmem>>, vector<1x128xf32>
    %57 = vector.broadcast %11 : vector<32x1xf32> to vector<32x128xf32>
    %58 = arith.mulf %54, %57 : vector<32x128xf32>
    %cst_20 = arith.constant dense<0.000000e+00> : vector<128xf32>
    %59 = vector.multi_reduction <add>, %58, %cst_20 [0] : vector<32x128xf32> to vector<128xf32>
    %60 = vector.shape_cast %59 : vector<128xf32> to vector<1x128xf32>
    %cst_21 = arith.constant 1.800000e+01 : f32
    %61 = vector.broadcast %cst_21 : f32 to vector<1x128xf32>
    %62 = arith.divf %60, %61 : vector<1x128xf32>
    %63 = arith.mulf %58, %54 : vector<32x128xf32>
    %cst_22 = arith.constant dense<0.000000e+00> : vector<128xf32>
    %64 = vector.multi_reduction <add>, %63, %cst_22 [0] : vector<32x128xf32> to vector<128xf32>
    %65 = vector.shape_cast %64 : vector<128xf32> to vector<1x128xf32>
    %cst_23 = arith.constant 1.800000e+01 : f32
    %66 = vector.broadcast %cst_23 : f32 to vector<1x128xf32>
    %67 = arith.divf %65, %66 : vector<1x128xf32>
    %68 = arith.mulf %62, %62 : vector<1x128xf32>
    %69 = arith.subf %67, %68 : vector<1x128xf32>
    %cst_24 = arith.constant 9.99999974E-6 : f32
    %70 = vector.broadcast %cst_24 : f32 to vector<1x128xf32>
    %71 = arith.addf %69, %70 : vector<1x128xf32>
    %72 = math.rsqrt %71 : vector<1x128xf32>
    %73 = arith.mulf %55, %72 : vector<1x128xf32>
    %74 = arith.mulf %62, %73 : vector<1x128xf32>
    %75 = arith.subf %56, %74 : vector<1x128xf32>
    %76 = vector.broadcast %73 : vector<1x128xf32> to vector<32x128xf32>
    %77 = arith.mulf %54, %76 : vector<32x128xf32>
    %78 = vector.broadcast %75 : vector<1x128xf32> to vector<32x128xf32>
    %79 = arith.addf %77, %78 : vector<32x128xf32>
    %cst_25 = arith.constant 0.000000e+00 : f32
    %80 = vector.broadcast %cst_25 : f32 to vector<32x128xf32>
    %81 = arith.maximumf %79, %80 : vector<32x128xf32>
    %c31_i32_26 = arith.constant 31 : i32
    %82 = tpu.dynamic_rotate %81 by %c31_i32_26 dim 0 : vector<32x128xf32>, i32 -> vector<32x128xf32>
    %c28_i32_27 = arith.constant 28 : i32
    %83 = tpu.dynamic_rotate %81 by %c28_i32_27 dim 0 : vector<32x128xf32>, i32 -> vector<32x128xf32>
    %c27_i32_28 = arith.constant 27 : i32
    %84 = tpu.dynamic_rotate %81 by %c27_i32_28 dim 0 : vector<32x128xf32>, i32 -> vector<32x128xf32>
    %85 = tpu.concatenate %81, %82, %83, %84 in 1 : vector<32x128xf32>, vector<32x128xf32>, vector<32x128xf32>, vector<32x128xf32> -> vector<32x512xf32>
    %c0_29 = arith.constant 0 : index
    %c0_30 = arith.constant 0 : index
    %86 = vector.load %arg7[%c0_29, %c0_30] : memref<512x128xf32, #tpu.memory_space<vmem>>, vector<512x128xf32>
    %cst_31 = arith.constant dense<0.000000e+00> : vector<32x128xf32>
    %87 = tpu.matmul %85, %86, %cst_31 {dimension_numbers = #tpu.dot_dimension_numbers<[1], [0], [0], [1], [0, 0, 1, 1], [], []>} : vector<32x512xf32>, vector<512x128xf32>, vector<32x128xf32> -> vector<32x128xf32>
    %c0_32 = arith.constant 0 : index
    %c0_33 = arith.constant 0 : index
    %88 = vector.load %arg8[%c0_32, %c0_33] : memref<1x128xf32, #tpu.memory_space<vmem>>, vector<1x128xf32>
    %c0_34 = arith.constant 0 : index
    %c0_35 = arith.constant 0 : index
    %89 = vector.load %arg9[%c0_34, %c0_35] : memref<1x128xf32, #tpu.memory_space<vmem>>, vector<1x128xf32>
    %90 = vector.broadcast %18 : vector<32x1xf32> to vector<32x128xf32>
    %91 = arith.mulf %87, %90 : vector<32x128xf32>
    %cst_36 = arith.constant dense<0.000000e+00> : vector<128xf32>
    %92 = vector.multi_reduction <add>, %91, %cst_36 [0] : vector<32x128xf32> to vector<128xf32>
    %93 = vector.shape_cast %92 : vector<128xf32> to vector<1x128xf32>
    %cst_37 = arith.constant 8.000000e+00 : f32
    %94 = vector.broadcast %cst_37 : f32 to vector<1x128xf32>
    %95 = arith.divf %93, %94 : vector<1x128xf32>
    %96 = arith.mulf %91, %87 : vector<32x128xf32>
    %cst_38 = arith.constant dense<0.000000e+00> : vector<128xf32>
    %97 = vector.multi_reduction <add>, %96, %cst_38 [0] : vector<32x128xf32> to vector<128xf32>
    %98 = vector.shape_cast %97 : vector<128xf32> to vector<1x128xf32>
    %cst_39 = arith.constant 8.000000e+00 : f32
    %99 = vector.broadcast %cst_39 : f32 to vector<1x128xf32>
    %100 = arith.divf %98, %99 : vector<1x128xf32>
    %101 = arith.mulf %95, %95 : vector<1x128xf32>
    %102 = arith.subf %100, %101 : vector<1x128xf32>
    %cst_40 = arith.constant 9.99999974E-6 : f32
    %103 = vector.broadcast %cst_40 : f32 to vector<1x128xf32>
    %104 = arith.addf %102, %103 : vector<1x128xf32>
    %105 = math.rsqrt %104 : vector<1x128xf32>
    %106 = arith.mulf %88, %105 : vector<1x128xf32>
    %107 = arith.mulf %95, %106 : vector<1x128xf32>
    %108 = arith.subf %89, %107 : vector<1x128xf32>
    %109 = vector.broadcast %106 : vector<1x128xf32> to vector<32x128xf32>
    %110 = arith.mulf %87, %109 : vector<32x128xf32>
    %111 = vector.broadcast %108 : vector<1x128xf32> to vector<32x128xf32>
    %112 = arith.addf %110, %111 : vector<32x128xf32>
    %cst_41 = arith.constant 0.000000e+00 : f32
    %113 = vector.broadcast %cst_41 : f32 to vector<32x128xf32>
    %114 = arith.maximumf %112, %113 : vector<32x128xf32>
    %c0_42 = arith.constant 0 : index
    %c0_43 = arith.constant 0 : index
    %115 = vector.load %arg15[%c0_42, %c0_43] : memref<32x128xf32, #tpu.memory_space<vmem>>, vector<32x128xf32>
    tpu.vector_store %arg15[%c0_42, %c0_43], %114 {strides = array<i32>} : memref<32x128xf32, #tpu.memory_space<vmem>>, vector<32x128xf32>,
    %c0_44 = arith.constant 0 : index
    %c0_45 = arith.constant 0 : index
    %116 = tpu.strided_load %arg15[%c0_44, %c0_45] {strides = array<i32: 16, 1>} : memref<32x128xf32, #tpu.memory_space<vmem>>, vector<2x128xf32>
    %c1 = arith.constant 1 : index
    %c0_46 = arith.constant 0 : index
    %117 = tpu.strided_load %arg15[%c1, %c0_46] {strides = array<i32: 16, 1>} : memref<32x128xf32, #tpu.memory_space<vmem>>, vector<2x128xf32>
    %c4 = arith.constant 4 : index
    %c0_47 = arith.constant 0 : index
    %118 = tpu.strided_load %arg15[%c4, %c0_47] {strides = array<i32: 16, 1>} : memref<32x128xf32, #tpu.memory_space<vmem>>, vector<2x128xf32>
    %c5 = arith.constant 5 : index
    %c0_48 = arith.constant 0 : index
    %119 = tpu.strided_load %arg15[%c5, %c0_48] {strides = array<i32: 16, 1>} : memref<32x128xf32, #tpu.memory_space<vmem>>, vector<2x128xf32>
    %120 = tpu.concatenate %116, %117, %118, %119 in 1 : vector<2x128xf32>, vector<2x128xf32>, vector<2x128xf32>, vector<2x128xf32> -> vector<2x512xf32>
    %c0_49 = arith.constant 0 : index
    %c0_50 = arith.constant 0 : index
    %121 = vector.load %arg10[%c0_49, %c0_50] : memref<512x32xf32, #tpu.memory_space<vmem>>, vector<512x32xf32>
    %cst_51 = arith.constant dense<0.000000e+00> : vector<2x32xf32>
    %122 = tpu.matmul %120, %121, %cst_51 {dimension_numbers = #tpu.dot_dimension_numbers<[1], [0], [0], [1], [0, 0, 1, 1], [], []>} : vector<2x512xf32>, vector<512x32xf32>, vector<2x32xf32> -> vector<2x32xf32>
    %c0_52 = arith.constant 0 : index
    %c0_53 = arith.constant 0 : index
    %123 = vector.load %arg11[%c0_52, %c0_53] : memref<1x32xf32, #tpu.memory_space<vmem>>, vector<1x32xf32>
    %124 = vector.broadcast %123 : vector<1x32xf32> to vector<2x32xf32>
    %125 = arith.addf %122, %124 : vector<2x32xf32>
    %cst_54 = arith.constant 0.000000e+00 : f32
    %126 = vector.broadcast %cst_54 : f32 to vector<2x32xf32>
    %127 = arith.maximumf %125, %126 : vector<2x32xf32>
    %c0_55 = arith.constant 0 : index
    %c0_56 = arith.constant 0 : index
    %128 = vector.load %arg12[%c0_55, %c0_56] : memref<32x128xf32, #tpu.memory_space<vmem>>, vector<32x128xf32>
    %cst_57 = arith.constant dense<0.000000e+00> : vector<2x128xf32>
    %129 = tpu.matmul %127, %128, %cst_57 {dimension_numbers = #tpu.dot_dimension_numbers<[1], [0], [0], [1], [0, 0, 1, 1], [], []>} : vector<2x32xf32>, vector<32x128xf32>, vector<2x128xf32> -> vector<2x128xf32>
    %c0_58 = arith.constant 0 : index
    %c0_59 = arith.constant 0 : index
    %130 = vector.load %arg13[%c0_58, %c0_59] : memref<1x128xf32, #tpu.memory_space<vmem>>, vector<1x128xf32>
    %131 = vector.broadcast %130 : vector<1x128xf32> to vector<2x128xf32>
    %132 = arith.addf %129, %131 : vector<2x128xf32>
    %c0_60 = arith.constant 0 : index
    %c0_61 = arith.constant 0 : index
    %133 = vector.load %arg14[%c0_60, %c0_61] : memref<2x128xf32, #tpu.memory_space<vmem>>, vector<2x128xf32>
    tpu.vector_store %arg14[%c0_60, %c0_61], %132 {strides = array<i32>} : memref<2x128xf32, #tpu.memory_space<vmem>>, vector<2x128xf32>,
    return
  }
}

</mosaic_0001>

<bundles_post_ra>
// kernel: dqn_forward.1
= control target key start
LH: loop header
LB: loop body
LE: loop exit
PB: predicated region body
PF: predicated region fallthrough
CT: control target
= control target key end

     0   :  { %19 = vsyncpa [#allocation4], 0  ;;  %s1769_s0 = inlined_call_operand.vmem [shape: f32[32,1], index: 0, kind: input, shape index: {}]   ;;  %s1770_s1 = inlined_call_operand.vmem [shape: f32[1,64], index: 1, kind: input, shape index: {}]   ;;  %s1771_s2 = inlined_call_operand.vmem [shape: f32[1,64], index: 2, kind: input, shape index: {}]   ;;  %s1772_s3 = inlined_call_operand.vmem [shape: f32[1,64], index: 3, kind: input, shape index: {}]   ;;  %s1773_s4 = inlined_call_operand.hbm [shape: f32[256,128], index: 4, kind: input, shape index: {}]   ;;  %s1774_s5 = inlined_call_operand.vmem [shape: f32[1,128], index: 5, kind: input, shape index: {}]   ;;  %s1775_s6 = inlined_call_operand.vmem [shape: f32[1,128], index: 6, kind: input, shape index: {}]   ;;  %s1776_s7 = inlined_call_operand.vmem [shape: f32[512,128], index: 7, kind: input, shape index: {}]   ;;  %s1777_s8 = inlined_call_operand.vmem [shape: f32[1,128], index: 8, kind: input, shape index: {}]   ;;  %s1778_s9 = inlined_call_operand.vmem [shape: f32[1,128], index: 9, kind: input, shape index: {}]   ;;  %s1779_s10 = inlined_call_operand.vmem [shape: f32[512,32], index: 10, kind: input, shape index: {}]   ;;  %s1780_s11 = inlined_call_operand.vmem [shape: f32[1,32], index: 11, kind: input, shape index: {}]   ;;  %s1781_s12 = inlined_call_operand.vmem [shape: f32[32,128], index: 12, kind: input, shape index: {}]   ;;  %s1782_s13 = inlined_call_operand.vmem [shape: f32[1,128], index: 13, kind: input, shape index: {}]   ;;  %s1783_s14 = inlined_call_operand.hbm [shape: f32[2,128], index: 14, kind: output, shape index: {}]  }
   0x1   :  { %20 = vsyncpa [#allocation5], 0  ;;  %s33_s15 = sshll.u32 %s1773_s4, 4  ;;  %s1044_s16 = smov [#allocation3]   ;;  %s34_s15 = int_to_ptr.hbm [resolvable:$true] %s33_s15 }
   0x2   :  { %s35_s17 = sshll.u32 %s1044_s16, 4  ;;  %s1045_s18 = smov 128   ;;  %s36_s17 = int_to_ptr.vmem [resolvable:$true] %s35_s17 }
   0x3   :  { %s1046_s19 = smov 8  }
   0x4   :  { %41 = dma.hbm_to_vmem [thread:$0]  %s34_s15, 4096, %s36_s17, [#allocation4], %s1045_s18, %s1045_s18, %s1046_s19  }
   0x5   :  { %1040 = dma.done.wait [#allocation4], 4096  }
   0x6   :  { %1041 = vsyncadd [#allocation4], 4294963200  ;;  %v1047_v0 = vmov 0   ;;  %v119_v1 = vld [vmem:[%s1769_s0 + $0x10] sm:$0xff]  ;;  %v117_v2 = vld [vmem:[%s1769_s0] sm:$0xff]  ;;  %v1048_v8 = vmov 32.0  }
   0x7   :  { %956 = vset.pattern.permute.xlu1 %v1047_v0  ;;  %955 = vset.pattern.permute.xlu0 %v1047_v0  ;;  %v120_v3 = vld [vmem:[%s1769_s0 + $0x18] sm:$0xff]  ;;  %v118_v4 = vld [vmem:[%s1769_s0 + $0x8] sm:$0xff]  ;;  %v977_v7 = vld [vmem:[%s1770_s1] ss:$0 sm:$0xff]  ;;  %980 = vrcp.f32 %v1048_v8  ;;  %vm151_vm0 = vcmask 523264  }
   0x8   :  { %134 = vperm.xlu1 %956, %v119_v1   ;;  %124 = vperm.xlu0 %955, %v117_v2   ;;  %v307_v61 = vld [vmem:[#allocation3 + $0x78] sm:$0xff]  ;;  %v306_v63 = vld [vmem:[#allocation3 + $0x70] sm:$0xff]  ;;  %v149_v1 = vld [vmem:[%s1771_s2] sm:$0x1]  ;;  %s1049_s2 = smov 64  }
   0x9   :  { %v323_v62 = vld [vmem:[#allocation3 + $0xf8] sm:$0xff]  ;;  %324 = vmatpush.msra.mxu0 %v307_v61  ;;  %v322_v0 = vld [vmem:[#allocation3 + $0xf0] sm:$0xff] }
   0xa   :  { %353 = vmatpush.msra.mxu1 %v323_v62  ;;  %v295_v61 = vld [vmem:[#allocation3 + $0x18] sm:$0xff] }
   0xb   :  { %325 = vmatpush.msra.mxu0 %v306_v63  ;;  %v311_v62 = vld [vmem:[#allocation3 + $0x98] sm:$0xff]  ;;  %v294_v63 = vld [vmem:[#allocation3 + $0x10] sm:$0xff] }
   0xc   :  { %354 = vmatpush.msra.mxu1 %v322_v0  ;;  %v310_v0 = vld [vmem:[#allocation3 + $0x90] sm:$0xff] }
   0xd   :  { %v981_v10 = vpop.eup %980 }
   0xe   :  { %v166_v17 = vmul.f32 32.0, %v981_v10  ;;  %vm170_vm1 = vweird.f32 %v981_v10 }
  0x10   :  { %139 = vperm.xlu1 %956, %v120_v3   ;;  %129 = vperm.xlu0 %955, %v118_v4   ;;  %v167_v31 = vsub.f32 1.0, %v166_v17  ;;  %v305_v3 = vld [vmem:[#allocation3 + $0x68] sm:$0xff]  ;;  %v319_v17 = vld [vmem:[#allocation3 + $0xd8] sm:$0xff] }
  0x11   :  { %v321_v4 = vld [vmem:[#allocation3 + $0xe8] sm:$0xff]  ;;  %326 = vmatpush.msra.mxu0 %v305_v3 }
  0x12   :  { %v168_v37 = vmul.f32 %v981_v10, %v167_v31  ;;  %355 = vmatpush.msra.mxu1 %v321_v4  ;;  %v293_v4 = vld [vmem:[#allocation3 + $0x8] sm:$0xff] }
  0x14   :  { %v169_v42 = vadd.f32 %v981_v10, %v168_v37  ;;  %v315_v37 = vld [vmem:[#allocation3 + $0xb8] sm:$0xff] }
  0x16   :  { %v171_v47 = vsel %vm170_vm1, %v981_v10, %v169_v42  ;;  %v150_v10 = vld [vmem:[%s1772_s3] sm:$0x1] }
  0x7a   :  { %v135_v5 = vpop.permute.xlu1 %134  ;;  %v125_v6 = vpop.permute.xlu0 %124 }
  0x7b   :  { %v1147_v9 = vmul.f32 %v977_v7, %v125_v6  ;;  %v1149_v11 = vmul.f32 %v977_v7, %v135_v5  ;;  %v304_v6 = vld [vmem:[#allocation3 + $0x60] sm:$0xff] }
  0x7c   :  { %327 = vmatpush.msra.mxu0 %v304_v6  ;;  %v292_v6 = vld [vmem:[#allocation3] sm:$0xff] }
  0x7d   :  { %v173_v14 = vmul.f32 %v1147_v9, %v1147_v9  ;;  %v175_v18 = vmul.f32 %v1149_v11, %v1149_v11  ;;  %v152_v19 = vsel %vm151_vm0, %v1147_v9, 0.0  ;;  %v155_v23 = vsel %vm151_vm0, %v1149_v11, 0.0 }
  0x7f   :  { %v177_v24 = vsel %vm151_vm0, %v173_v14, 0.0  ;;  %v180_v29 = vsel %vm151_vm0, %v175_v18, 0.0  ;;  %v64_v18 = vlaneseq }
  0x82   :  { %v140_v12 = vpop.permute.xlu1 %139  ;;  %v130_v13 = vpop.permute.xlu0 %129 }
  0x83   :  { %v1153_v15 = vmul.f32 %v977_v7, %v140_v12  ;;  %v1155_v16 = vmul.f32 %v977_v7, %v130_v13  ;;  %v320_v7 = vld [vmem:[#allocation3 + $0xe0] sm:$0xff]  ;;  %v303_v12 = vld [vmem:[#allocation3 + $0x58] sm:$0xff] }
  0x84   :  { %356 = vmatpush.msra.mxu1 %v320_v7  ;;  %328 = vmatpush.msra.mxu0 %v303_v12  ;;  %v308_v7 = vld [vmem:[#allocation3 + $0x80] sm:$0xff] }
  0x85   :  { %v153_v20 = vsel %vm151_vm0, %v1155_v16, 0.0  ;;  %v174_v21 = vmul.f32 %v1155_v16, %v1155_v16  ;;  %v176_v25 = vmul.f32 %v1153_v15, %v1153_v15  ;;  %v157_v30 = vsel %vm151_vm0, %v1153_v15, 0.0 }
  0x86   :  { %v154_v22 = vadd.f32 %v153_v20, %v152_v19  ;;  %v302_v19 = vld [vmem:[#allocation3 + $0x50] sm:$0xff]  ;;  %357 = vmatpush.msra.mxu1 %v319_v17 }
  0x87   :  { %v178_v26 = vsel %vm151_vm0, %v174_v21, 0.0  ;;  %v182_v34 = vsel %vm151_vm0, %v176_v25, 0.0  ;;  %v318_v21 = vld [vmem:[#allocation3 + $0xd0] sm:$0xff]  ;;  %329 = vmatpush.msra.mxu0 %v302_v19 }
  0x88   :  { %v156_v27 = vadd.f32 %v155_v23, %v154_v22  ;;  %v179_v28 = vadd.f32 %v178_v26, %v177_v24  ;;  %v301_v23 = vld [vmem:[#allocation3 + $0x48] sm:$0xff]  ;;  %358 = vmatpush.msra.mxu1 %v318_v21 }
  0x89   :  { %330 = vmatpush.msra.mxu0 %v301_v23 }
  0x8a   :  { %v158_v32 = vadd.f32 %v157_v30, %v156_v27  ;;  %v181_v33 = vadd.f32 %v180_v29, %v179_v28  ;;  %v317_v28 = vld [vmem:[#allocation3 + $0xc8] sm:$0xff]  ;;  %v1185_v29 = vshrl.u32 %v64_v18, 7  ;;  %v300_v30 = vld [vmem:[#allocation3 + $0x40] sm:$0xff] }
  0x8b   :  { %359 = vmatpush.msra.mxu1 %v317_v28  ;;  %331 = vmatpush.msra.mxu0 %v300_v30 }
  0x8c   :  { %v159_v35 = vrot.slane %v158_v32, 4  ;;  %v183_v36 = vadd.f32 %v182_v34, %v181_v33  ;;  %vm229_vm5 = vcmp.lt.s32.totalorder %v1185_v29, 7  ;;  %vm247_vm6 = vcmp.lt.s32.totalorder %v1185_v29, 3 }
  0x8d   :  { %vm238_vm7 = vcmp.lt.s32.totalorder %v1185_v29, 4 }
  0x8e   :  { %v160_v38 = vadd.f32 %v159_v35, %v158_v32  ;;  %v184_v39 = vrot.slane %v183_v36, 4  ;;  %v299_v35 = vld [vmem:[#allocation3 + $0x38] sm:$0xff] }
  0x8f   :  { %332 = vmatpush.msra.mxu0 %v299_v35 }
  0x90   :  { %v161_v40 = vrot.slane %v160_v38, 2  ;;  %v185_v41 = vadd.f32 %v184_v39, %v183_v36 }
  0x92   :  { %v162_v43 = vadd.f32 %v161_v40, %v160_v38  ;;  %v186_v44 = vrot.slane %v185_v41, 2  ;;  %v298_v38 = vld [vmem:[#allocation3 + $0x30] sm:$0xff] }
  0x93   :  { %333 = vmatpush.msra.mxu0 %v298_v38 }
  0x94   :  { %v163_v45 = vrot.slane %v162_v43, 1  ;;  %v187_v46 = vadd.f32 %v186_v44, %v185_v41 }
  0x96   :  { %v164_v48 = vadd.f32 %v163_v45, %v162_v43  ;;  %v188_v49 = vrot.slane %v187_v46, 1  ;;  %v314_v43 = vld [vmem:[#allocation3 + $0xb0] sm:$0xff] }
  0x98   :  { %v172_v50 = vmul.f32 %v171_v47, %v164_v48  ;;  %v189_v51 = vadd.f32 %v188_v49, %v187_v46  ;;  %v297_v48 = vld [vmem:[#allocation3 + $0x28] sm:$0xff] }
  0x99   :  { %334 = vmatpush.msra.mxu0 %v297_v48 }
  0x9a   :  { %v190_v52 = vmul.f32 %v189_v51, %v171_v47  ;;  %v191_v53 = vmul.f32 %v172_v50, %v172_v50  ;;  %v313_v51 = vld [vmem:[#allocation3 + $0xa8] sm:$0xff] }
  0x9c   :  { %v192_v54 = vsub.f32 %v190_v52, %v191_v53 }
  0x9e   :  { %v193_v55 = vadd.f32 1e-05, %v192_v54 }
  0xa0   :  { %982 = vrsqrt.f32 %v193_v55  ;;  %vm200_vm3 = vweird.f32 %v193_v55 }
  0xa6   :  { %v983_v56 = vpop.eup %982 }
  0xa7   :  { %v195_v57 = vmul.f32 %v983_v56, %v193_v55  ;;  %vm201_vm2 = vweird.f32 %v983_v56 }
  0xa8   :  { %vm202_vm4 = vmor %vm200_vm3, %vm201_vm2 }
  0xa9   :  { %v196_v58 = vmul.f32 %v983_v56, %v195_v57 }
  0xab   :  { %v197_v59 = vmul.f32 0.5, %v196_v58 }
  0xad   :  { %v198_v60 = vsub.f32 1.5, %v197_v59  ;;  %v312_v59 = vld [vmem:[#allocation3 + $0xa0] sm:$0xff] }
  0xaf   :  { %v199_v2 = vmul.f32 %v983_v56, %v198_v60 }
  0xb1   :  { %v203_v5 = vsel %vm202_vm4, %v983_v56, %v199_v2  ;;  %v296_v56 = vld [vmem:[#allocation3 + $0x20] sm:$0xff] }
  0xb2   :  { %v204_v8 = vmul.f32 %v203_v5, %v149_v1  ;;  %335 = vmatpush.msra.mxu0 %v296_v56  ;;  %v309_v5 = vld [vmem:[#allocation3 + $0x88] sm:$0xff] }
  0xb4   :  { %v205_v13 = vmul.f32 %v204_v8, %v172_v50  ;;  %v208_v14 = vperm.slane %v204_v8, 0  ;;  %336 = vmatpush.msra.mxu0 %v295_v61 }
  0xb6   :  { %v206_v20 = vsub.f32 %v150_v10, %v205_v13  ;;  %v211_v22 = vmul.f32 %v208_v14, %v1155_v16  ;;  %v212_v25 = vmul.f32 %v208_v14, %v1149_v11  ;;  %v213_v26 = vmul.f32 %v208_v14, %v1153_v15  ;;  %v316_v16 = vld [vmem:[#allocation3 + $0xc0] sm:$0xff]  ;;  %337 = vmatpush.msra.mxu0 %v294_v63 }
  0xb7   :  { %v210_v27 = vmul.f32 %v208_v14, %v1147_v9  ;;  %360 = vmatpush.msra.mxu1 %v316_v16 }
  0xb8   :  { %v215_v24 = vperm.slane %v206_v20, 0  ;;  %338 = vmatpush.msra.mxu0 %v293_v4 }
  0xb9   :  { %361 = vmatpush.msra.mxu1 %v315_v37 }
  0xba   :  { %v218_v31 = vadd.f32 %v215_v24, %v211_v22  ;;  %v219_v32 = vadd.f32 %v215_v24, %v212_v25  ;;  %v220_v33 = vadd.f32 %v215_v24, %v213_v26  ;;  %v217_v34 = vadd.f32 %v215_v24, %v210_v27  ;;  %339 = vmatpush.msra.mxu0 %v292_v6 }
  0xbb   :  { %362 = vmatpush.msra.mxu1 %v314_v43  ;;  %v1248_v43 = vadd.s32 16, %v1185_v29 }
  0xbc   :  { %v1187_v36 = vmax.f32 %v218_v31, 0.0  ;;  %v1189_v11 = vmax.f32 %v219_v32, 0.0  ;;  %v1191_v15 = vmax.f32 %v220_v33, 0.0  ;;  %v1193_v9 = vmax.f32 %v217_v34, 0.0 }
  0xbd   :  { %363 = vmatpush.msra.mxu1 %v313_v51  ;;  %v1050_v51 = vmov 18.0  }
  0xbe   :  { %v227_v39 = vrot.slane %v1189_v11, 1  ;;  %v228_v40 = vrot.slane %v1191_v15, 1  ;;  %v245_v41 = vrot.slane %v1189_v11, 5  ;;  %v246_v42 = vrot.slane %v1191_v15, 5 }
  0xbf   :  { %v225_v44 = vrot.slane %v1193_v9, 1  ;;  %v243_v45 = vrot.slane %v1193_v9, 5  ;;  %v226_v46 = vrot.slane %v1187_v36, 1  ;;  %v244_v47 = vrot.slane %v1187_v36, 5  ;;  %364 = vmatpush.msra.mxu1 %v312_v59 }
  0xc0   :  { %v230_v49 = vsel %vm229_vm5, %v227_v39, %v228_v40  ;;  %v248_v50 = vsel %vm247_vm6, %v245_v41, %v246_v42  ;;  %v234_v8 = vrot.slane %v1193_v9, 4  ;;  %v235_v10 = vrot.slane %v1187_v36, 4 }
  0xc1   :  { %v967_v52 = vpack.i.bf16 %v248_v50, %v230_v49  ;;  %v233_v53 = vsel %vm229_vm5, %v228_v40, %v225_v44  ;;  %v251_v54 = vsel %vm247_vm6, %v246_v42, %v243_v45  ;;  %v232_v55 = vsel %vm229_vm5, %v225_v44, %v226_v46  ;;  %365 = vmatpush.msra.mxu1 %v311_v62 }
  0xc2   :  { %v972_v57 = vpack.i.bf16 %v251_v54, %v233_v53  ;;  %v250_v58 = vsel %vm247_vm6, %v243_v45, %v244_v47  ;;  %v231_v1 = vsel %vm229_vm5, %v226_v46, %v227_v39  ;;  %v249_v2 = vsel %vm247_vm6, %v244_v47, %v245_v41 }
  0xc3   :  { %968 = vrot.lane.b32.xlu0 %v967_v52, %s1049_s2  ;;  %v957_v60 = vpack.i.bf16 %v250_v58, %v232_v55  ;;  %366 = vmatpush.msra.mxu1 %v310_v0  ;;  %v962_v3 = vpack.i.bf16 %v249_v2, %v231_v1  ;;  %v241_v17 = vsel %vm238_vm7, %v234_v8, %v235_v10  ;;  %v236_v20 = vrot.slane %v1189_v11, 4  ;;  %v492_v1 = vld [vmem:[%s1776_s7 + $0x78] sm:$0xff] }
  0xc4   :  { %973 = vrot.lane.b32.xlu1 %v972_v57, %s1049_s2  ;;  %v237_v27 = vrot.slane %v1191_v15, 4  ;;  %v68_v46 = vadd.s32 24, %v1185_v29  ;;  %v75_v47 = vand.u32 3, %v1248_v43  ;;  %984 = vrcp.f32 %v1050_v51  ;;  %541 = vmatpush.msra.mxu2 %v492_v1  ;;  %v503_v51 = vld [vmem:[%s1776_s7 + $0xd0] sm:$0xff] }
  0xc5   :  { %958 = vrot.lane.b32.xlu2 %v957_v60, %s1049_s2  ;;  %367 = vmatpush.msra.mxu1 %v309_v5  ;;  %v240_v24 = vsel %vm238_vm7, %v235_v10, %v236_v20  ;;  %v1051_v52 = vmov 0.0  }
  0xc6   :  { %v239_v32 = vsel %vm238_vm7, %v236_v20, %v237_v27  ;;  %v72_v48 = vand.u32 15, %v68_v46  ;;  %v76_v49 = vand.u32 3, %v68_v46  ;;  %vm79_vm12 = vcmp.lt.s32.totalorder %v75_v47, 3 }
  0xc7   :  { %368 = vmatpush.msra.mxu1 %v308_v7  ;;  %v940_v59 = vsel %vm79_vm12, 1.0, %v1051_v52 }
  0xc8   :  { %vm80_vm13 = vcmp.lt.s32.totalorder %v76_v49, 3  ;;  %vm84_vm14 = vcmp.lt.s32.totalorder %v72_v48, 12  ;;  %v486_v48 = vld [vmem:[%s1776_s7 + $0x48] sm:$0xff] }
  0xc9   :  { %vm88_vm15 = vmand %vm80_vm13, %vm84_vm14 }
  0xca   :  { %v1267_v61 = vpop.eup %984 }
  0xcb   :  { %v398_v5 = vmul.f32 18.0, %v1267_v61 }
  0xcd   :  { %963 = vrot.lane.b32.xlu2 %v962_v3, %s1049_s2  ;;  %v941_v3 = vsel %vm88_vm15, 1.0, %v1051_v52 }
 0x11f   :  { %v959_v12 = vpop.permute.xlu2 %958 }
 0x120   :  { %v961_v13 = vunpack.i.h.bf16 %v959_v12  ;;  %v960_v14 = vunpack.i.l.bf16 %v959_v12  ;;  %v491_v12 = vld [vmem:[%s1776_s7 + $0x70] sm:$0xff] }
 0x121   :  { %542 = vmatpush.msra.mxu2 %v491_v12  ;;  %v500_v12 = vld [vmem:[%s1776_s7 + $0xb8] sm:$0xff] }
 0x122   :  { %v284_v18 = vsel %vm151_vm0, %v1193_v9, %v960_v14  ;;  %v288_v19 = vsel %vm151_vm0, %v241_v17, %v961_v13  ;;  %v242_v9 = vsel %vm238_vm7, %v237_v27, %v234_v8  ;;  %v508_v13 = vld [vmem:[%s1776_s7 + $0xf8] sm:$0xff] }
 0x123   :  { %340 = vmatmul.f32.vlgmr.msra.gmra.mxu0 %v284_v18  ;;  %369 = vmatmul.f32.vlgmr.msra.gmra.mxu1 %v288_v19  ;;  %v524_v14 = vld [vmem:[%s1776_s7 + $0x178] sm:$0xff] }
 0x124   :  { %v540_v17 = vld [vmem:[%s1776_s7 + $0x1f8] sm:$0xff]  ;;  %570 = vmatpush.msra.mxu3 %v508_v13  ;;  %599 = vmatpush.msrb.mxu0 %v524_v14 }
 0x125   :  { %628 = vmatpush.msrb.mxu1 %v540_v17  ;;  %v516_v13 = vld [vmem:[%s1776_s7 + $0x138] sm:$0xff] }
 0x126   :  { %v532_v14 = vld [vmem:[%s1776_s7 + $0x1b8] sm:$0xff] }
 0x127   :  { %v964_v21 = vpop.permute.xlu2 %963 }
 0x128   :  { %v966_v22 = vunpack.i.h.bf16 %v964_v21  ;;  %v965_v23 = vunpack.i.l.bf16 %v964_v21  ;;  %v490_v21 = vld [vmem:[%s1776_s7 + $0x68] sm:$0xff] }
 0x129   :  { %543 = vmatpush.msra.mxu2 %v490_v21  ;;  %v515_v21 = vld [vmem:[%s1776_s7 + $0x130] sm:$0xff] }
 0x12a   :  { %v285_v25 = vsel %vm151_vm0, %v1187_v36, %v965_v23  ;;  %v289_v26 = vsel %vm151_vm0, %v240_v24, %v966_v22  ;;  %v399_v22 = vsub.f32 1.0, %v398_v5  ;;  %v507_v23 = vld [vmem:[%s1776_s7 + $0xf0] sm:$0xff]  ;;  %v517_v5 = vld [vmem:[%s1776_s7 + $0x140] sm:$0xff] }
 0x12b   :  { %343 = vmatmul.f32.gmra.mxu0 %v285_v25  ;;  %372 = vmatmul.f32.gmra.mxu1 %v289_v26  ;;  %v523_v24 = vld [vmem:[%s1776_s7 + $0x170] sm:$0xff] }
 0x12c   :  { %v539_v25 = vld [vmem:[%s1776_s7 + $0x1f0] sm:$0xff]  ;;  %571 = vmatpush.msra.mxu3 %v507_v23  ;;  %600 = vmatpush.msrb.mxu0 %v523_v24 }
 0x12d   :  { %629 = vmatpush.msrb.mxu1 %v539_v25  ;;  %v481_v25 = vld [vmem:[%s1776_s7 + $0x20] sm:$0xff] }
 0x135   :  { %v969_v28 = vpop.permute.xlu0 %968 }
 0x136   :  { %v971_v30 = vunpack.i.h.bf16 %v969_v28  ;;  %v970_v31 = vunpack.i.l.bf16 %v969_v28  ;;  %v974_v16 = vpop.permute.xlu1 %973 }
 0x137   :  { %v976_v35 = vunpack.i.h.bf16 %v974_v16  ;;  %v975_v36 = vunpack.i.l.bf16 %v974_v16 }
 0x138   :  { %v286_v33 = vsel %vm151_vm0, %v1189_v11, %v970_v31  ;;  %v290_v34 = vsel %vm151_vm0, %v239_v32, %v971_v30  ;;  %v66_v11 = vadd.s32 8, %v1185_v29  ;;  %v489_v30 = vld [vmem:[%s1776_s7 + $0x60] sm:$0xff]  ;;  %v506_v31 = vld [vmem:[%s1776_s7 + $0xe8] sm:$0xff] }
 0x139   :  { %346 = vmatmul.f32.gmra.mxu0 %v286_v33  ;;  %375 = vmatmul.f32.gmra.mxu1 %v290_v34  ;;  %v287_v37 = vsel %vm151_vm0, %v1191_v15, %v975_v36  ;;  %v291_v38 = vsel %vm151_vm0, %v242_v9, %v976_v35  ;;  %v73_v15 = vand.u32 3, %v1185_v29  ;;  %v522_v32 = vld [vmem:[%s1776_s7 + $0x168] sm:$0xff]  ;;  %v488_v35 = vld [vmem:[%s1776_s7 + $0x58] sm:$0xff]  ;;  %v400_v36 = vmul.f32 %v1267_v61, %v399_v22  ;;  %v505_v9 = vld [vmem:[%s1776_s7 + $0xe0] sm:$0xff] }
 0x13a   :  { %v70_v41 = vand.u32 15, %v66_v11  ;;  %v74_v42 = vand.u32 3, %v66_v11  ;;  %544 = vmatpush.msra.mxu2 %v489_v30  ;;  %v538_v33 = vld [vmem:[%s1776_s7 + $0x1e8] sm:$0xff]  ;;  %572 = vmatpush.msra.mxu3 %v506_v31  ;;  %v487_v11 = vld [vmem:[%s1776_s7 + $0x50] sm:$0xff]  ;;  %vm402_vm0 = vweird.f32 %v1267_v61  ;;  %v480_v31 = vld [vmem:[%s1776_s7 + $0x18] sm:$0xff] }
 0x13b   :  { %vm77_vm11 = vcmp.lt.s32.totalorder %v73_v15, 3  ;;  %601 = vmatpush.msrb.mxu0 %v522_v32  ;;  %630 = vmatpush.msrb.mxu1 %v538_v33  ;;  %v401_v49 = vadd.f32 %v1267_v61, %v400_v36  ;;  %v531_v22 = vld [vmem:[%s1776_s7 + $0x1b0] sm:$0xff]  ;;  %v497_v32 = vld [vmem:[%s1776_s7 + $0xa0] sm:$0xff]  ;;  %vm97_vm4 = vcmp.lt.s32.totalorder %v73_v15, 2 }
 0x13c   :  { %vm78_vm8 = vcmp.lt.s32.totalorder %v74_v42, 3  ;;  %vm82_vm9 = vcmp.lt.s32.totalorder %v70_v41, 12  ;;  %v938_v58 = vsel %vm77_vm11, 1.0, %v1051_v52  ;;  %545 = vmatpush.msra.mxu2 %v488_v35  ;;  %573 = vmatpush.msra.mxu3 %v505_v9  ;;  %v504_v41 = vld [vmem:[%s1776_s7 + $0xd8] sm:$0xff]  ;;  %v513_v33 = vld [vmem:[%s1776_s7 + $0x120] sm:$0xff] }
 0x13d   :  { %vm86_vm10 = vmand %vm78_vm8, %vm82_vm9  ;;  %v520_v42 = vld [vmem:[%s1776_s7 + $0x158] sm:$0xff] }
 0x13e   :  { %v939_v53 = vsel %vm86_vm10, 1.0, %v1051_v52  ;;  %546 = vmatpush.msra.mxu2 %v487_v11  ;;  %574 = vmatpush.msra.mxu3 %v504_v41  ;;  %v496_v35 = vld [vmem:[%s1776_s7 + $0x98] sm:$0xff]  ;;  %v527_v11 = vld [vmem:[%s1776_s7 + $0x190] sm:$0xff]  ;;  %v477_v41 = vld [vmem:[%s1776_s7] sm:$0xff]  ;;  %vm896_vm10 = vcmask 261120  }
 0x13f   :  { %v512_v9 = vld [vmem:[%s1776_s7 + $0x118] sm:$0xff] }
 0x140   :  { %547 = vmatpush.msra.mxu2 %v486_v48  ;;  %575 = vmatpush.msra.mxu3 %v503_v51  ;;  %v509_v48 = vld [vmem:[%s1776_s7 + $0x100] sm:$0xff] }
 0x141   :  { %349 = vmatmul.f32.gmra.mxu0 %v287_v37  ;;  %378 = vmatmul.f32.gmra.mxu1 %v291_v38  ;;  %v521_v37 = vld [vmem:[%s1776_s7 + $0x160] sm:$0xff] }
 0x142   :  { %v537_v38 = vld [vmem:[%s1776_s7 + $0x1e0] sm:$0xff]  ;;  %602 = vmatpush.msrb.mxu0 %v521_v37  ;;  %v528_v37 = vld [vmem:[%s1776_s7 + $0x198] sm:$0xff] }
 0x143   :  { %631 = vmatpush.msrb.mxu1 %v537_v38  ;;  %v478_v38 = vld [vmem:[%s1776_s7 + $0x8] sm:$0xff] }
 0x144   :  { %603 = vmatpush.msrb.mxu0 %v520_v42  ;;  %v494_v42 = vld [vmem:[%s1776_s7 + $0x88] sm:$0xff] }
 0x1a0   :  { %v341_v39 = vpop.f32.mrf.mxu0  ;;  %v370_v40 = vpop.f32.mrf.mxu1 }
 0x1a1   :  { %v1260_v56 = vadd.f32 %v370_v40, %v341_v39 }
 0x1a3   :  { %v384_v62 = vmul.f32 %v938_v58, %v1260_v56 }
 0x1a5   :  { %v405_v6 = vmul.f32 %v384_v62, %v1260_v56 }
 0x1a8   :  { %v344_v44 = vpop.f32.mrf.mxu0  ;;  %v373_v45 = vpop.f32.mrf.mxu1 }
 0x1a9   :  { %v1255_v50 = vadd.f32 %v373_v45, %v344_v44  ;;  %v536_v44 = vld [vmem:[%s1776_s7 + $0x1d8] sm:$0xff] }
 0x1aa   :  { %632 = vmatpush.msrb.mxu1 %v536_v44  ;;  %v510_v44 = vld [vmem:[%s1776_s7 + $0x108] sm:$0xff] }
 0x1ab   :  { %v385_v60 = vmul.f32 %v939_v53, %v1255_v50  ;;  %v519_v53 = vld [vmem:[%s1776_s7 + $0x150] sm:$0xff] }
 0x1ac   :  { %604 = vmatpush.msrb.mxu0 %v519_v53 }
 0x1ad   :  { %v406_v0 = vmul.f32 %v385_v60, %v1255_v50  ;;  %v388_v7 = vadd.f32 %v385_v60, %v384_v62  ;;  %v502_v60 = vld [vmem:[%s1776_s7 + $0xc8] sm:$0xff] }
 0x1ae   :  { %v518_v62 = vld [vmem:[%s1776_s7 + $0x148] sm:$0xff]  ;;  %576 = vmatpush.msra.mxu3 %v502_v60 }
 0x1af   :  { %v409_v18 = vadd.f32 %v406_v0, %v405_v6  ;;  %605 = vmatpush.msrb.mxu0 %v518_v62  ;;  %v533_v6 = vld [vmem:[%s1776_s7 + $0x1c0] sm:$0xff] }
 0x1b1   :  { %606 = vmatpush.msrb.mxu0 %v517_v5 }
 0x1b3   :  { %607 = vmatpush.msrb.mxu0 %v516_v13 }
 0x1b5   :  { %608 = vmatpush.msrb.mxu0 %v515_v21 }
 0x1b6   :  { %v347_v54 = vpop.f32.mrf.mxu0  ;;  %v376_v55 = vpop.f32.mrf.mxu1 }
 0x1b7   :  { %v1262_v57 = vadd.f32 %v376_v55, %v347_v54  ;;  %v535_v54 = vld [vmem:[%s1776_s7 + $0x1d0] sm:$0xff] }
 0x1b8   :  { %633 = vmatpush.msrb.mxu1 %v535_v54 }
 0x1b9   :  { %v386_v63 = vmul.f32 %v940_v59, %v1262_v57  ;;  %v485_v59 = vld [vmem:[%s1776_s7 + $0x40] sm:$0xff] }
 0x1ba   :  { %548 = vmatpush.msra.mxu2 %v485_v59  ;;  %v382_v59 = vld [vmem:[%s1774_s5] sm:$0x1] }
 0x1bb   :  { %v407_v8 = vmul.f32 %v386_v63, %v1262_v57  ;;  %v389_v19 = vadd.f32 %v388_v7, %v386_v63  ;;  %v534_v63 = vld [vmem:[%s1776_s7 + $0x1c8] sm:$0xff] }
 0x1bc   :  { %634 = vmatpush.msrb.mxu1 %v534_v63 }
 0x1bd   :  { %v410_v26 = vadd.f32 %v409_v18, %v407_v8 }
 0x1be   :  { %v350_v2 = vpop.f32.mrf.mxu0  ;;  %v379_v4 = vpop.f32.mrf.mxu1  ;;  %635 = vmatpush.msrb.mxu1 %v533_v6 }
 0x1bf   :  { %v1279_v10 = vadd.f32 %v379_v4, %v350_v2  ;;  %v484_v2 = vld [vmem:[%s1776_s7 + $0x38] sm:$0xff]  ;;  %v501_v4 = vld [vmem:[%s1776_s7 + $0xc0] sm:$0xff] }
 0x1c0   :  { %549 = vmatpush.msra.mxu2 %v484_v2  ;;  %577 = vmatpush.msra.mxu3 %v501_v4 }
 0x1c1   :  { %v387_v20 = vmul.f32 %v941_v3, %v1279_v10  ;;  %v403_v3 = vsel %vm402_vm0, %v1267_v61, %v401_v49  ;;  %v483_v61 = vld [vmem:[%s1776_s7 + $0x30] sm:$0xff]  ;;  %636 = vmatpush.msrb.mxu1 %v532_v14  ;;  %v525_v49 = vld [vmem:[%s1776_s7 + $0x180] sm:$0xff] }
 0x1c2   :  { %550 = vmatpush.msra.mxu2 %v483_v61  ;;  %578 = vmatpush.msra.mxu3 %v500_v12 }
 0x1c3   :  { %v390_v27 = vadd.f32 %v389_v19, %v387_v20  ;;  %v408_v28 = vmul.f32 %v387_v20, %v1279_v10  ;;  %v482_v19 = vld [vmem:[%s1776_s7 + $0x28] sm:$0xff]  ;;  %v499_v20 = vld [vmem:[%s1776_s7 + $0xb0] sm:$0xff]  ;;  %637 = vmatpush.msrb.mxu1 %v531_v22 }
 0x1c4   :  { %551 = vmatpush.msra.mxu2 %v482_v19  ;;  %579 = vmatpush.msra.mxu3 %v499_v20 }
 0x1c5   :  { %v391_v34 = vrot.slane %v390_v27, 4  ;;  %v411_v16 = vadd.f32 %v410_v26, %v408_v28  ;;  %v498_v26 = vld [vmem:[%s1776_s7 + $0xa8] sm:$0xff] }
 0x1c6   :  { %552 = vmatpush.msra.mxu2 %v481_v25  ;;  %v530_v28 = vld [vmem:[%s1776_s7 + $0x1a8] sm:$0xff]  ;;  %580 = vmatpush.msra.mxu3 %v498_v26 }
 0x1c7   :  { %v392_v39 = vadd.f32 %v391_v34, %v390_v27  ;;  %v412_v40 = vrot.slane %v411_v16, 4  ;;  %v514_v27 = vld [vmem:[%s1776_s7 + $0x128] sm:$0xff]  ;;  %638 = vmatpush.msrb.mxu1 %v530_v28  ;;  %v529_v34 = vld [vmem:[%s1776_s7 + $0x1a0] sm:$0xff] }
 0x1c8   :  { %609 = vmatpush.msrb.mxu0 %v514_v27  ;;  %553 = vmatpush.msra.mxu2 %v480_v31 }
 0x1c9   :  { %v393_v45 = vrot.slane %v392_v39, 2  ;;  %v413_v46 = vadd.f32 %v412_v40, %v411_v16  ;;  %v479_v16 = vld [vmem:[%s1776_s7 + $0x10] sm:$0xff]  ;;  %581 = vmatpush.msra.mxu3 %v497_v32  ;;  %639 = vmatpush.msrb.mxu1 %v529_v34 }
 0x1ca   :  { %610 = vmatpush.msrb.mxu0 %v513_v33  ;;  %554 = vmatpush.msra.mxu2 %v479_v16  ;;  %v511_v40 = vld [vmem:[%s1776_s7 + $0x110] sm:$0xff] }
 0x1cb   :  { %v394_v55 = vadd.f32 %v393_v45, %v392_v39  ;;  %v414_v58 = vrot.slane %v413_v46, 2  ;;  %v495_v39 = vld [vmem:[%s1776_s7 + $0x90] sm:$0xff]  ;;  %582 = vmatpush.msra.mxu3 %v496_v35  ;;  %640 = vmatpush.msrb.mxu1 %v528_v37  ;;  %v526_v45 = vld [vmem:[%s1776_s7 + $0x188] sm:$0xff] }
 0x1cc   :  { %611 = vmatpush.msrb.mxu0 %v512_v9  ;;  %555 = vmatpush.msra.mxu2 %v478_v38 }
 0x1cd   :  { %v395_v0 = vrot.slane %v394_v55, 1  ;;  %v415_v1 = vadd.f32 %v414_v58, %v413_v46  ;;  %583 = vmatpush.msra.mxu3 %v495_v39  ;;  %641 = vmatpush.msrb.mxu1 %v527_v11  ;;  %v493_v46 = vld [vmem:[%s1776_s7 + $0x80] sm:$0xff] }
 0x1ce   :  { %612 = vmatpush.msrb.mxu0 %v511_v40  ;;  %556 = vmatpush.msra.mxu2 %v477_v41 }
 0x1cf   :  { %v396_v7 = vadd.f32 %v395_v0, %v394_v55  ;;  %v416_v8 = vrot.slane %v415_v1, 1  ;;  %584 = vmatpush.msra.mxu3 %v494_v42  ;;  %642 = vmatpush.msrb.mxu1 %v526_v45  ;;  %v383_v0 = vld [vmem:[%s1775_s6] sm:$0x1] }
 0x1d0   :  { %613 = vmatpush.msrb.mxu0 %v510_v44 }
 0x1d1   :  { %v1395_v17 = vmul.f32 %v403_v3, %v396_v7  ;;  %v417_v18 = vadd.f32 %v416_v8, %v415_v1  ;;  %585 = vmatpush.msra.mxu3 %v493_v46  ;;  %643 = vmatpush.msrb.mxu1 %v525_v49 }
 0x1d2   :  { %614 = vmatpush.msrb.mxu0 %v509_v48 }
 0x1d3   :  { %v418_v23 = vmul.f32 %v417_v18, %v403_v3  ;;  %v419_v24 = vmul.f32 %v1395_v17, %v1395_v17 }
 0x1d5   :  { %v420_v30 = vsub.f32 %v418_v23, %v419_v24 }
 0x1d7   :  { %v421_v36 = vadd.f32 1e-05, %v420_v30 }
 0x1d9   :  { %986 = vrsqrt.f32 %v421_v36  ;;  %vm428_vm2 = vweird.f32 %v421_v36 }
 0x1df   :  { %v987_v51 = vpop.eup %986 }
 0x1e0   :  { %v423_v53 = vmul.f32 %v987_v51, %v421_v36  ;;  %vm429_vm1 = vweird.f32 %v987_v51 }
 0x1e1   :  { %vm430_vm3 = vmor %vm428_vm2, %vm429_vm1 }
 0x1e2   :  { %v424_v54 = vmul.f32 %v987_v51, %v423_v53 }
 0x1e4   :  { %v425_v55 = vmul.f32 0.5, %v424_v54 }
 0x1e6   :  { %v426_v58 = vsub.f32 1.5, %v425_v55 }
 0x1e8   :  { %v427_v60 = vmul.f32 %v987_v51, %v426_v58 }
 0x1ea   :  { %v431_v62 = vsel %vm430_vm3, %v987_v51, %v427_v60 }
 0x1eb   :  { %v432_v63 = vmul.f32 %v431_v62, %v382_v59 }
 0x1ed   :  { %v433_v1 = vmul.f32 %v432_v63, %v1395_v17  ;;  %v436_v2 = vperm.slane %v432_v63, 0 }
 0x1ef   :  { %v434_v3 = vsub.f32 %v383_v0, %v433_v1  ;;  %v438_v5 = vmul.f32 %v436_v2, %v1260_v56  ;;  %v439_v6 = vmul.f32 %v436_v2, %v1255_v50  ;;  %v440_v61 = vmul.f32 %v436_v2, %v1262_v57 }
 0x1f0   :  { %v441_v24 = vmul.f32 %v436_v2, %v1279_v10  ;;  %v1052_v1 = vmov 8.0  }
 0x1f1   :  { %v443_v4 = vperm.slane %v434_v3, 0  ;;  %988 = vrcp.f32 %v1052_v1  ;;  %v765_v1 = vld [vmem:[%s1779_s10 + $0xd0] sm:$0xff] }
 0x1f3   :  { %v445_v7 = vadd.f32 %v443_v4, %v438_v5  ;;  %v446_v8 = vadd.f32 %v443_v4, %v439_v6  ;;  %v447_v14 = vadd.f32 %v443_v4, %v440_v61  ;;  %v448_v25 = vadd.f32 %v443_v4, %v441_v24 }
 0x1f4   :  { %v942_v4 = vsel %vm97_vm4, 1.0, %v1051_v52 }
 0x1f5   :  { %v449_v12 = vmax.f32 %v445_v7, 0.0  ;;  %v450_v13 = vmax.f32 %v446_v8, 0.0  ;;  %v451_v56 = vmax.f32 %v447_v14, 0.0  ;;  %v452_v30 = vmax.f32 %v448_v25, 0.0 }
 0x1f7   :  { %557 = vmatmul.f32.vlgmr.msra.gmra.mxu2 %v449_v12  ;;  %v453_v18 = vrot.slane %v449_v12, 1  ;;  %v454_v19 = vrot.slane %v450_v13, 1  ;;  %v461_v20 = vrot.slane %v449_v12, 4  ;;  %v462_v21 = vrot.slane %v450_v13, 4  ;;  %v1525_v15 = vpop.eup %988 }
 0x1f8   :  { %v469_v17 = vrot.slane %v449_v12, 5  ;;  %v470_v22 = vrot.slane %v450_v13, 5  ;;  %v455_v26 = vrot.slane %v451_v56, 1  ;;  %v463_v27 = vrot.slane %v451_v56, 4 }
 0x1f9   :  { %v459_v23 = vsel %vm229_vm5, %v453_v18, %v454_v19  ;;  %v467_v50 = vsel %vm238_vm7, %v461_v20, %v462_v21  ;;  %v471_v28 = vrot.slane %v451_v56, 5  ;;  %v456_v10 = vrot.slane %v452_v30, 1 }
 0x1fa   :  { %586 = vmatmul.f32.vlgmr.msra.gmra.mxu3 %v459_v23  ;;  %615 = vmatmul.f32.vlgmr.msrb.gmra.mxu0 %v467_v50  ;;  %v475_v57 = vsel %vm247_vm6, %v469_v17, %v470_v22  ;;  %v458_v31 = vsel %vm229_vm5, %v454_v19, %v455_v26  ;;  %v466_v32 = vsel %vm238_vm7, %v462_v21, %v463_v27  ;;  %v464_v34 = vrot.slane %v452_v30, 4 }
 0x1fb   :  { %644 = vmatmul.f32.vlgmr.msrb.gmra.mxu1 %v475_v57  ;;  %v474_v33 = vsel %vm247_vm6, %v470_v22, %v471_v28  ;;  %v472_v16 = vrot.slane %v452_v30, 5  ;;  %v457_v35 = vsel %vm229_vm5, %v455_v26, %v456_v10  ;;  %v460_v37 = vsel %vm229_vm5, %v456_v10, %v453_v18 }
 0x1fc   :  { %v465_v36 = vsel %vm238_vm7, %v463_v27, %v464_v34  ;;  %v468_v38 = vsel %vm238_vm7, %v464_v34, %v461_v20  ;;  %vm99_vm5 = vcmp.lt.s32.totalorder %v75_v47, 2  ;;  %v673_v18 = vmul.f32 8.0, %v1525_v15  ;;  %v754_v27 = vld [vmem:[%s1779_s10 + $0x78] sm:$0xff]  ;;  %v753_v34 = vld [vmem:[%s1779_s10 + $0x70] sm:$0xff] }
 0x1fd   :  { %v473_v9 = vsel %vm247_vm6, %v471_v28, %v472_v16  ;;  %v476_v39 = vsel %vm247_vm6, %v472_v16, %v469_v17  ;;  %v943_v5 = vsel %vm99_vm5, 1.0, %v1051_v52  ;;  %v770_v28 = vld [vmem:[%s1779_s10 + $0xf8] sm:$0xff]  ;;  %807 = vmatpush.msrb.mxu2 %v754_v27  ;;  %v769_v16 = vld [vmem:[%s1779_s10 + $0xf0] sm:$0xff]  ;;  %vm677_vm6 = vweird.f32 %v1525_v15  ;;  %v792_v27 = vld [vmem:[%s1779_s10 + $0x1a8] sm:$0xff] }
 0x1fe   :  { %v674_v50 = vsub.f32 1.0, %v673_v18  ;;  %827 = vmatpush.msrb.mxu3 %v770_v28  ;;  %v795_v18 = vld [vmem:[%s1779_s10 + $0x1c0] sm:$0xff] }
 0x1ff   :  { %560 = vmatmul.f32.gmra.mxu2 %v450_v13  ;;  %v743_v28 = vld [vmem:[%s1779_s10 + $0x20] sm:$0xff] }
 0x200   :  { %808 = vmatpush.msrb.mxu2 %v753_v34  ;;  %828 = vmatpush.msrb.mxu3 %v769_v16  ;;  %v774_v34 = vld [vmem:[%s1779_s10 + $0x118] sm:$0xff] }
 0x201   :  { %v790_v16 = vld [vmem:[%s1779_s10 + $0x198] sm:$0xff] }
 0x202   :  { %589 = vmatmul.f32.gmra.mxu3 %v458_v31  ;;  %618 = vmatmul.f32.gmra.mxu0 %v466_v32  ;;  %v675_v31 = vmul.f32 %v1525_v15, %v674_v50  ;;  %v802_v32 = vld [vmem:[%s1779_s10 + $0x1f8] sm:$0xff]  ;;  %v761_v50 = vld [vmem:[%s1779_s10 + $0xb0] sm:$0xff] }
 0x203   :  { %647 = vmatmul.f32.gmra.mxu1 %v474_v33 }
 0x204   :  { %867 = vmatpush.msra.mxu1 %v802_v32  ;;  %v791_v32 = vld [vmem:[%s1779_s10 + $0x1a0] sm:$0xff] }
 0x207   :  { %563 = vmatmul.f32.gmra.mxu2 %v451_v56 }
 0x20a   :  { %592 = vmatmul.f32.gmra.mxu3 %v457_v35  ;;  %621 = vmatmul.f32.gmra.mxu0 %v465_v36  ;;  %v785_v35 = vld [vmem:[%s1779_s10 + $0x170] sm:$0xff] }
 0x20b   :  { %650 = vmatmul.f32.gmra.mxu1 %v473_v9  ;;  %v801_v36 = vld [vmem:[%s1779_s10 + $0x1f0] sm:$0xff] }
 0x20c   :  { %868 = vmatpush.msra.mxu1 %v801_v36  ;;  %v757_v36 = vld [vmem:[%s1779_s10 + $0x90] sm:$0xff] }
 0x20f   :  { %566 = vmatmul.f32.gmra.mxu2 %v452_v30  ;;  %v786_v30 = vld [vmem:[%s1779_s10 + $0x178] sm:$0xff] }
 0x210   :  { %847 = vmatpush.msra.mxu0 %v786_v30  ;;  %v759_v30 = vld [vmem:[%s1779_s10 + $0xa0] sm:$0xff] }
 0x212   :  { %595 = vmatmul.f32.gmra.mxu3 %v460_v37  ;;  %624 = vmatmul.f32.gmra.mxu0 %v468_v38  ;;  %v752_v38 = vld [vmem:[%s1779_s10 + $0x68] sm:$0xff] }
 0x213   :  { %653 = vmatmul.f32.gmra.mxu1 %v476_v39  ;;  %848 = vmatpush.msra.mxu0 %v785_v35  ;;  %v768_v39 = vld [vmem:[%s1779_s10 + $0xe8] sm:$0xff]  ;;  %v741_v35 = vld [vmem:[%s1779_s10 + $0x10] sm:$0xff] }
 0x214   :  { %809 = vmatpush.msrb.mxu2 %v752_v38  ;;  %829 = vmatpush.msrb.mxu3 %v768_v39  ;;  %v740_v39 = vld [vmem:[%s1779_s10 + $0x8] sm:$0xff] }
 0x277   :  { %v616_v40 = vpop.f32.mrf.mxu0 }
 0x278   :  { %v645_v41 = vpop.f32.mrf.mxu1 }
 0x27a   :  { %v558_v11 = vpop.f32.mrf.mxu2 }
 0x27d   :  { %v587_v42 = vpop.f32.mrf.mxu3 }
 0x27e   :  { %v588_v51 = vadd.f32 %v587_v42, %v558_v11  ;;  %v676_v11 = vadd.f32 %v1525_v15, %v675_v31  ;;  %v775_v31 = vld [vmem:[%s1779_s10 + $0x120] sm:$0xff] }
 0x27f   :  { %v619_v45 = vpop.f32.mrf.mxu0 }
 0x280   :  { %v648_v46 = vpop.f32.mrf.mxu1  ;;  %v617_v59 = vadd.f32 %v616_v40, %v588_v51  ;;  %v784_v40 = vld [vmem:[%s1779_s10 + $0x168] sm:$0xff] }
 0x281   :  { %849 = vmatpush.msra.mxu0 %v784_v40  ;;  %v756_v40 = vld [vmem:[%s1779_s10 + $0x88] sm:$0xff] }
 0x282   :  { %v561_v44 = vpop.f32.mrf.mxu2  ;;  %v1519_v2 = vadd.f32 %v645_v41, %v617_v59  ;;  %v800_v41 = vld [vmem:[%s1779_s10 + $0x1e8] sm:$0xff]  ;;  %v678_v59 = vsel %vm677_vm6, %v1525_v15, %v676_v11 }
 0x283   :  { %869 = vmatpush.msra.mxu1 %v800_v41  ;;  %v764_v15 = vld [vmem:[%s1779_s10 + $0xc8] sm:$0xff] }
 0x284   :  { %v659_v8 = vmul.f32 %v942_v4, %v1519_v2  ;;  %v781_v4 = vld [vmem:[%s1779_s10 + $0x150] sm:$0xff]  ;;  %v772_v41 = vld [vmem:[%s1779_s10 + $0x108] sm:$0xff] }
 0x285   :  { %v590_v48 = vpop.f32.mrf.mxu3 }
 0x286   :  { %v591_v49 = vadd.f32 %v590_v48, %v561_v44  ;;  %v680_v19 = vmul.f32 %v659_v8, %v1519_v2  ;;  %v783_v48 = vld [vmem:[%s1779_s10 + $0x160] sm:$0xff] }
 0x287   :  { %v622_v55 = vpop.f32.mrf.mxu0  ;;  %850 = vmatpush.msra.mxu0 %v783_v48  ;;  %v771_v48 = vld [vmem:[%s1779_s10 + $0x100] sm:$0xff] }
 0x288   :  { %v620_v54 = vadd.f32 %v619_v45, %v591_v49  ;;  %v651_v62 = vpop.f32.mrf.mxu1  ;;  %v751_v45 = vld [vmem:[%s1779_s10 + $0x60] sm:$0xff] }
 0x289   :  { %810 = vmatpush.msrb.mxu2 %v751_v45  ;;  %v799_v49 = vld [vmem:[%s1779_s10 + $0x1e0] sm:$0xff] }
 0x28a   :  { %v564_v53 = vpop.f32.mrf.mxu2  ;;  %v649_v63 = vadd.f32 %v648_v46, %v620_v54  ;;  %v767_v46 = vld [vmem:[%s1779_s10 + $0xe0] sm:$0xff]  ;;  %870 = vmatpush.msra.mxu1 %v799_v49  ;;  %v750_v54 = vld [vmem:[%s1779_s10 + $0x58] sm:$0xff] }
 0x28b   :  { %830 = vmatpush.msrb.mxu3 %v767_v46  ;;  %811 = vmatpush.msrb.mxu2 %v750_v54  ;;  %v755_v45 = vld [vmem:[%s1779_s10 + $0x80] sm:$0xff] }
 0x28c   :  { %v660_v6 = vmul.f32 0.0, %v649_v63  ;;  %v787_v49 = vld [vmem:[%s1779_s10 + $0x180] sm:$0xff] }
 0x28d   :  { %v593_v58 = vpop.f32.mrf.mxu3  ;;  %v657_v54 = vld [vmem:[%s1777_s8] sm:$0x1] }
 0x28e   :  { %v594_v60 = vadd.f32 %v593_v58, %v564_v53  ;;  %v681_v12 = vmul.f32 %v660_v6, %v649_v63  ;;  %v663_v20 = vadd.f32 %v660_v6, %v659_v8  ;;  %v782_v58 = vld [vmem:[%s1779_s10 + $0x158] sm:$0xff]  ;;  %v780_v8 = vld [vmem:[%s1779_s10 + $0x148] sm:$0xff] }
 0x28f   :  { %v625_v61 = vpop.f32.mrf.mxu0  ;;  %851 = vmatpush.msra.mxu0 %v782_v58 }
 0x290   :  { %v623_v0 = vadd.f32 %v622_v55, %v594_v60  ;;  %v654_v14 = vpop.f32.mrf.mxu1  ;;  %v684_v17 = vadd.f32 %v681_v12, %v680_v19  ;;  %v766_v55 = vld [vmem:[%s1779_s10 + $0xd8] sm:$0xff]  ;;  %v747_v12 = vld [vmem:[%s1779_s10 + $0x40] sm:$0xff] }
 0x291   :  { %831 = vmatpush.msrb.mxu3 %v766_v55  ;;  %v798_v60 = vld [vmem:[%s1779_s10 + $0x1d8] sm:$0xff]  ;;  %852 = vmatpush.msra.mxu0 %v781_v4 }
 0x292   :  { %v1521_v3 = vadd.f32 %v651_v62, %v623_v0  ;;  %v567_v7 = vpop.f32.mrf.mxu2  ;;  %871 = vmatpush.msra.mxu1 %v798_v60  ;;  %v749_v0 = vld [vmem:[%s1779_s10 + $0x50] sm:$0xff]  ;;  %v658_v60 = vld [vmem:[%s1778_s9] sm:$0x1] }
 0x293   :  { %812 = vmatpush.msrb.mxu2 %v749_v0  ;;  %832 = vmatpush.msrb.mxu3 %v765_v1 }
 0x294   :  { %v661_v43 = vmul.f32 %v943_v5, %v1521_v3  ;;  %v797_v5 = vld [vmem:[%s1779_s10 + $0x1d0] sm:$0xff]  ;;  %853 = vmatpush.msra.mxu0 %v780_v8 }
 0x295   :  { %v596_v29 = vpop.f32.mrf.mxu3  ;;  %872 = vmatpush.msra.mxu1 %v797_v5  ;;  %833 = vmatpush.msrb.mxu3 %v764_v15 }
 0x296   :  { %v597_v47 = vadd.f32 %v596_v29, %v567_v7  ;;  %v682_v52 = vmul.f32 %v661_v43, %v1521_v3  ;;  %v664_v22 = vadd.f32 %v663_v20, %v661_v43  ;;  %v748_v29 = vld [vmem:[%s1779_s10 + $0x48] sm:$0xff]  ;;  %v746_v20 = vld [vmem:[%s1779_s10 + $0x38] sm:$0xff] }
 0x297   :  { %813 = vmatpush.msrb.mxu2 %v748_v29  ;;  %v796_v43 = vld [vmem:[%s1779_s10 + $0x1c8] sm:$0xff] }
 0x298   :  { %v626_v13 = vadd.f32 %v625_v61, %v597_v47  ;;  %v685_v56 = vadd.f32 %v684_v17, %v682_v52  ;;  %873 = vmatpush.msra.mxu1 %v796_v43  ;;  %v762_v52 = vld [vmem:[%s1779_s10 + $0xb8] sm:$0xff] }
 0x299   :  { %814 = vmatpush.msrb.mxu2 %v747_v12  ;;  %v794_v17 = vld [vmem:[%s1779_s10 + $0x1b8] sm:$0xff] }
 0x29a   :  { %v655_v21 = vadd.f32 %v654_v14, %v626_v13  ;;  %v763_v13 = vld [vmem:[%s1779_s10 + $0xc0] sm:$0xff]  ;;  %874 = vmatpush.msra.mxu1 %v795_v18 }
 0x29b   :  { %v779_v14 = vld [vmem:[%s1779_s10 + $0x140] sm:$0xff]  ;;  %834 = vmatpush.msrb.mxu3 %v763_v13  ;;  %815 = vmatpush.msrb.mxu2 %v746_v20 }
 0x29c   :  { %v662_v23 = vmul.f32 0.0, %v655_v21  ;;  %854 = vmatpush.msra.mxu0 %v779_v14  ;;  %875 = vmatpush.msra.mxu1 %v794_v17  ;;  %v888_v13 = vld [vmem:[%s1781_s12] sm:$0xff] }
 0x29d   :  { %835 = vmatpush.msrb.mxu3 %v762_v52  ;;  %v978_v14 = vld [vmem:[%s1780_s11] ss:$0 sm:$0xff]  ;;  %s928_s11 = sshll.u32 %s1783_s14, 4  ;;  %s929_s11 = int_to_ptr.hbm [resolvable:$true] %s928_s11 }
 0x29e   :  { %v665_v57 = vadd.f32 %v664_v22, %v662_v23  ;;  %v683_v24 = vmul.f32 %v662_v23, %v655_v21  ;;  %v778_v21 = vld [vmem:[%s1779_s10 + $0x138] sm:$0xff]  ;;  %v745_v23 = vld [vmem:[%s1779_s10 + $0x30] sm:$0xff] }
 0x29f   :  { %855 = vmatpush.msra.mxu0 %v778_v21  ;;  %816 = vmatpush.msrb.mxu2 %v745_v23 }
 0x2a0   :  { %v666_v25 = vrot.slane %v665_v57, 4  ;;  %v686_v26 = vadd.f32 %v685_v56, %v683_v24  ;;  %v777_v56 = vld [vmem:[%s1779_s10 + $0x130] sm:$0xff]  ;;  %836 = vmatpush.msrb.mxu3 %v761_v50  ;;  %v744_v24 = vld [vmem:[%s1779_s10 + $0x28] sm:$0xff] }
 0x2a1   :  { %856 = vmatpush.msra.mxu0 %v777_v56  ;;  %817 = vmatpush.msrb.mxu2 %v744_v24  ;;  %v979_v56 = vld [vmem:[%s1782_s13] ss:$0 sm:$0xff] }
 0x2a2   :  { %v667_v33 = vadd.f32 %v666_v25, %v665_v57  ;;  %v687_v10 = vrot.slane %v686_v26, 4  ;;  %v793_v57 = vld [vmem:[%s1779_s10 + $0x1b0] sm:$0xff]  ;;  %v760_v25 = vld [vmem:[%s1779_s10 + $0xa8] sm:$0xff] }
 0x2a3   :  { %876 = vmatpush.msra.mxu1 %v793_v57  ;;  %837 = vmatpush.msrb.mxu3 %v760_v25 }
 0x2a4   :  { %v668_v9 = vrot.slane %v667_v33, 2  ;;  %v688_v37 = vadd.f32 %v687_v10, %v686_v26  ;;  %v776_v26 = vld [vmem:[%s1779_s10 + $0x128] sm:$0xff]  ;;  %818 = vmatpush.msrb.mxu2 %v743_v28  ;;  %v758_v10 = vld [vmem:[%s1779_s10 + $0x98] sm:$0xff] }
 0x2a5   :  { %857 = vmatpush.msra.mxu0 %v776_v26  ;;  %877 = vmatpush.msra.mxu1 %v792_v27 }
 0x2a6   :  { %v669_v42 = vadd.f32 %v668_v9, %v667_v33  ;;  %v689_v44 = vrot.slane %v688_v37, 2  ;;  %v742_v33 = vld [vmem:[%s1779_s10 + $0x18] sm:$0xff]  ;;  %838 = vmatpush.msrb.mxu3 %v759_v30  ;;  %v773_v9 = vld [vmem:[%s1779_s10 + $0x110] sm:$0xff] }
 0x2a7   :  { %858 = vmatpush.msra.mxu0 %v775_v31  ;;  %878 = vmatpush.msra.mxu1 %v791_v32 }
 0x2a8   :  { %v670_v51 = vrot.slane %v669_v42, 1  ;;  %v690_v53 = vadd.f32 %v689_v44, %v688_v37  ;;  %819 = vmatpush.msrb.mxu2 %v742_v33  ;;  %839 = vmatpush.msrb.mxu3 %v758_v10  ;;  %v789_v37 = vld [vmem:[%s1779_s10 + $0x190] sm:$0xff]  ;;  %v739_v44 = vld [vmem:[%s1779_s10] sm:$0xff] }
 0x2a9   :  { %859 = vmatpush.msra.mxu0 %v774_v34  ;;  %879 = vmatpush.msra.mxu1 %v790_v16 }
 0x2aa   :  { %v671_v62 = vadd.f32 %v670_v51, %v669_v42  ;;  %v691_v63 = vrot.slane %v690_v53, 1  ;;  %820 = vmatpush.msrb.mxu2 %v741_v35  ;;  %840 = vmatpush.msrb.mxu3 %v757_v36  ;;  %v788_v42 = vld [vmem:[%s1779_s10 + $0x188] sm:$0xff] }
 0x2ab   :  { %860 = vmatpush.msra.mxu0 %v773_v9  ;;  %880 = vmatpush.msra.mxu1 %v789_v37 }
 0x2ac   :  { %v1610_v6 = vmul.f32 %v678_v59, %v671_v62  ;;  %v692_v7 = vadd.f32 %v691_v63, %v690_v53  ;;  %821 = vmatpush.msrb.mxu2 %v740_v39  ;;  %841 = vmatpush.msrb.mxu3 %v756_v40 }
 0x2ad   :  { %861 = vmatpush.msra.mxu0 %v772_v41  ;;  %881 = vmatpush.msra.mxu1 %v788_v42 }
 0x2ae   :  { %v693_v47 = vmul.f32 %v692_v7, %v678_v59  ;;  %v694_v61 = vmul.f32 %v1610_v6, %v1610_v6  ;;  %822 = vmatpush.msrb.mxu2 %v739_v44  ;;  %842 = vmatpush.msrb.mxu3 %v755_v45 }
 0x2af   :  { %862 = vmatpush.msra.mxu0 %v771_v48  ;;  %882 = vmatpush.msra.mxu1 %v787_v49 }
 0x2b0   :  { %v695_v19 = vsub.f32 %v693_v47, %v694_v61 }
 0x2b2   :  { %v1650_v22 = vadd.f32 1e-05, %v695_v19 }
 0x2b4   :  { %990 = vrsqrt.f32 %v1650_v22  ;;  %vm703_vm8 = vweird.f32 %v1650_v22 }
 0x2ba   :  { %v991_v38 = vpop.eup %990 }
 0x2bb   :  { %v698_v11 = vmul.f32 %v991_v38, %v1650_v22  ;;  %vm704_vm7 = vweird.f32 %v991_v38 }
 0x2bc   :  { %vm705_vm9 = vmor %vm703_vm8, %vm704_vm7 }
 0x2bd   :  { %v699_v46 = vmul.f32 %v991_v38, %v698_v11 }
 0x2bf   :  { %v700_v51 = vmul.f32 0.5, %v699_v46 }
 0x2c1   :  { %v701_v53 = vsub.f32 1.5, %v700_v51 }
 0x2c3   :  { %v702_v55 = vmul.f32 %v991_v38, %v701_v53 }
 0x2c5   :  { %v706_v58 = vsel %vm705_vm9, %v991_v38, %v702_v55 }
 0x2c6   :  { %v707_v59 = vmul.f32 %v706_v58, %v657_v54 }
 0x2c8   :  { %v708_v62 = vmul.f32 %v707_v59, %v1610_v6  ;;  %v711_v63 = vperm.slane %v707_v59, 0  ;;  %v889_v6 = vld [vmem:[%s1781_s12 + $0x8] sm:$0xff] }
 0x2ca   :  { %v709_v0 = vsub.f32 %v658_v60, %v708_v62  ;;  %v713_v1 = vmul.f32 %v711_v63, %v1519_v2  ;;  %v715_v4 = vmul.f32 %v711_v63, %v1521_v3  ;;  %v891_v2 = vld [vmem:[%s1781_s12 + $0x18] sm:$0xff]  ;;  %v890_v3 = vld [vmem:[%s1781_s12 + $0x10] sm:$0xff]  ;;  %s1053_s12 = smov [#allocation6]  }
 0x2cb   :  { %912 = vmatpush.msra.mxu2 %v891_v2  ;;  %s926_s17 = sshll.u32 %s1053_s12, 4  ;;  %s927_s17 = int_to_ptr.vmem [resolvable:$true] %s926_s17 }
 0x2cc   :  { %v718_v5 = vperm.slane %v709_v0, 0 }
 0x2cd   :  { %913 = vmatpush.msra.mxu2 %v890_v3 }
 0x2ce   :  { %v720_v7 = vadd.f32 %v718_v5, %v713_v1  ;;  %v722_v29 = vadd.f32 %v718_v5, %v715_v4 }
 0x2cf   :  { %914 = vmatpush.msra.mxu2 %v889_v6 }
 0x2d0   :  { %v724_v15 = vmax.f32 %v720_v7, 0.0  ;;  %v726_v8 = vmax.f32 %v722_v29, 0.0 }
 0x2d1   :  { %915 = vmatpush.msra.mxu2 %v888_v13 }
 0x2d2   :  { %728 = vst [vmem:[#allocation2] sm:$0xff] %v724_v15 }
 0x2d3   :  { %730 = vst [vmem:[#allocation2 + $0x10] sm:$0xff] %v726_v8 }
 0x2da   :  { %v732_v43 = vld [vmem:[#allocation2] ss:$16 sm:$0x3]  ;;  %v734_v47 = vld [vmem:[#allocation2 + $0x1] ss:$16 sm:$0x3] }
 0x2db   :  { %823 = vmatmul.f32.vlgmr.msrb.gmra.mxu2 %v732_v43  ;;  %843 = vmatmul.f32.vlgmr.msrb.gmra.mxu3 %v734_v47  ;;  %v736_v61 = vld [vmem:[#allocation2 + $0x4] ss:$16 sm:$0x3]  ;;  %v738_v12 = vld [vmem:[#allocation2 + $0x5] ss:$16 sm:$0x3] }
 0x2dc   :  { %863 = vmatmul.f32.vlgmr.msra.gmra.mxu0 %v736_v61  ;;  %883 = vmatmul.f32.vlgmr.msra.gmra.mxu1 %v738_v12 }
 0x359   :  { %v864_v21 = vpop.f32.mrf.mxu0  ;;  %v884_v22 = vpop.f32.mrf.mxu1 }
 0x35e   :  { %v824_v18 = vpop.f32.mrf.mxu2  ;;  %v844_v20 = vpop.f32.mrf.mxu3 }
 0x35f   :  { %v825_v19 = vadd.f32 %v978_v14, %v824_v18 }
 0x361   :  { %v845_v52 = vadd.f32 %v844_v20, %v825_v19 }
 0x363   :  { %v865_v17 = vadd.f32 %v864_v21, %v845_v52 }
 0x365   :  { %v885_v23 = vadd.f32 %v884_v22, %v865_v17 }
 0x367   :  { %v887_v50 = vmax.f32 %v885_v23, 0.0 }
 0x369   :  { %944 = vmatmul.msk.f32.vlgmr.msra.gmra.mxu2 %vm896_vm10, %v887_v50 }
 0x3ec   :  { %v917_v57 = vpop.f32.mrf.mxu2 }
 0x3ed   :  { %v918_v24 = vadd.f32 %v979_v56, %v917_v57 }
 0x3ef   :  { %920 = vst [vmem:[#allocation6] sm:$0x3] %v918_v24 }
 0x3f0   :  { %931 = dma.vmem_to_hbm [thread:$0]  %s927_s17, 32, %s929_s11, [#allocation5]  }
 0x3f1   :  { %1042 = dma.done.wait [#allocation5], 32  }
 0x3f2   :  { %1043 = vsyncadd [#allocation5], 4294967264 }
 0x3f3   :  { %936 = vsyncpa [#allocation4], 1 }
 0x3f4   :  { %937 = vsyncpa [#allocation5], 1 }

</bundles_post_ra>
